<compile_context>
chip_gen: v6e
topology: v6e:2x2x1
jax: 0.10.0
libtpu: 0.0.40
codegen_flags: <defaults>
</compile_context>

<pallas_src>
import functools
import math

import jax
import jax.numpy as jnp
from jax.experimental import pallas as pl
from jax.experimental.pallas import tpu as pltpu


def _layer_norm_kernel(x_ref, g_ref, b_ref, o_ref, *, epsilon, n_features):
    # x_ref: (block_rows, features)   g_ref/b_ref: (1, features) already f32
    x = x_ref[...].astype(jnp.float32)

    # Single-pass statistics (both reductions can overlap on the XLU).
    s1 = jnp.sum(x, axis=-1, keepdims=True)
    s2 = jnp.sum(x * x, axis=-1, keepdims=True)
    mean = s1 * (1.0 / n_features)
    # Unbiased variance (Bessel's correction) to match torch.std default.
    var = (s2 - n_features * mean * mean) / (n_features - 1)
    var = jnp.maximum(var, 0.0)  # guard tiny negative values from cancellation
    std = jnp.sqrt(var)

    # Per-row reciprocal on the (rows, 1) column: EUP approx + one Newton step
    # to get back to ~f32 accuracy at negligible cost.
    d = std + epsilon
    inv = pl.reciprocal(d, approx=True)
    inv = inv * (2.0 - d * inv)

    gamma = g_ref[...]
    beta = b_ref[...]

    y = (x - mean) * inv * gamma + beta
    o_ref[...] = y.astype(o_ref.dtype)


def _choose_block_rows(rows, features, itemsize):
    """Largest row-tile that keeps the per-step footprint small, preferring
    no-padding configurations and keeping enough grid steps for pipelining."""
    SUB = 8  # sublane granularity for f32
    # Per-row bytes: in+out tiles double-buffered in io dtype + ~2 f32 temps.
    bytes_per_row = features * (4 * itemsize + 8)
    budget = 8 << 20  # keep well under the 32 MiB scoped VMEM limit we request
    cap = max(SUB, budget // max(bytes_per_row, 1))
    cap = min(cap, 1024)
    cap = max(SUB, (cap // SUB) * SUB)

    if rows <= cap:
        # Single block: block_shape equals full array dim, no padding needed.
        return rows

    # Keep at least ~8 grid steps so pipelining / megacore have work to split.
    cap = min(cap, max(SUB, (rows // 8 // SUB) * SUB))

    # Prefer a block size that divides rows exactly (avoids the jnp.pad pass).
    for cand in range(cap, SUB - 1, -SUB):
        if rows % cand == 0:
            return cand
    return cap


def layer_normalization(x, gamma, beta, epsilon=1e-8, block_rows=None):
    """Layer norm over the last axis of `x` (any leading shape)."""
    features = x.shape[-1]
    lead_shape = x.shape[:-1]
    rows = math.prod(lead_shape) if lead_shape else 1

    x2d = x.reshape(rows, features)
    # Hoist the f32 casts of the grid-invariant params out of the kernel loop.
    g2d = gamma.astype(jnp.float32).reshape(1, features)
    b2d = beta.astype(jnp.float32).reshape(1, features)

    if block_rows is None:
        block_rows = _choose_block_rows(rows, features, jnp.dtype(x.dtype).itemsize)
    block_rows = max(1, min(block_rows, rows))

    # Pad rows only if the chosen block does not tile evenly (rare by construction).
    padded_rows = pl.cdiv(rows, block_rows) * block_rows
    if padded_rows != rows:
        x2d = jnp.pad(x2d, ((0, padded_rows - rows), (0, 0)))

    grid = (padded_rows // block_rows,)

    out = pl.pallas_call(
        functools.partial(_layer_norm_kernel, epsilon=epsilon, n_features=features),
        out_shape=jax.ShapeDtypeStruct((padded_rows, features), x.dtype),
        grid_spec=pltpu.PrefetchScalarGridSpec(
            num_scalar_prefetch=0,
            grid=grid,
            in_specs=[
                pl.BlockSpec((block_rows, features), lambda i: (i, 0)),
                pl.BlockSpec((1, features), lambda i: (0, 0)),
                pl.BlockSpec((1, features), lambda i: (0, 0)),
            ],
            out_specs=pl.BlockSpec((block_rows, features), lambda i: (i, 0)),
        ),
        compiler_params=pltpu.CompilerParams(
            dimension_semantics=("parallel",),
            vmem_limit_bytes=32 * 1024 * 1024,  # safe on v5e/v6e/v7x
        ),
    )(x2d, g2d, b2d)

    out = out[:rows]
    return out.reshape(*lead_shape, features) if lead_shape else out.reshape(features)


def _reference(x, gamma, beta, epsilon=1e-8):
    mean = jnp.mean(x, axis=-1, keepdims=True)
    n = x.shape[-1]
    var = jnp.sum((x - mean) ** 2, axis=-1, keepdims=True) / (n - 1)
    std = jnp.sqrt(var)
    return gamma * (x - mean) / (std + epsilon) + beta


if __name__ == "__main__":
    key = jax.random.PRNGKey(0)
    batch, seq, hidden = 2, 8, 32

    x = jax.random.normal(key, (batch, seq, hidden), dtype=jnp.float32)
    # Deterministic parameter init matching nn.Parameter(torch.ones/zeros(features)).
    gamma = jnp.ones((hidden,), dtype=jnp.float32)
    beta = jnp.zeros((hidden,), dtype=jnp.float32)

    out = layer_normalization(x, gamma, beta, epsilon=1e-8)
    out = jax.block_until_ready(out)

    ref = _reference(x, gamma, beta, epsilon=1e-8)
    assert out.shape == x.shape
    assert jnp.allclose(out, ref, atol=1e-4, rtol=1e-4), "mismatch vs reference"

    print("KERNEL_OK")
</pallas_src>

<mosaic_0001>
module attributes {stable_mosaic.version = 11 : i64} {
  func.func @_layer_norm_kernel(%arg0: i32, %arg1: memref<16x32xf32, #tpu.memory_space<vmem>>, %arg2: memref<1x32xf32, #tpu.memory_space<vmem>>, %arg3: memref<1x32xf32, #tpu.memory_space<vmem>>, %arg4: memref<16x32xf32, #tpu.memory_space<vmem>>) attributes {dimension_semantics = [#tpu.dimension_semantics<parallel>], iteration_bounds = array<i64: 1>, scalar_prefetch = 0 : i64, scratch_operands = 0 : i64, tpu.core_type = #tpu.core_type<tc>, window_params = [{transform_indices = @transform_0, window_bounds = array<i64: 16, 32>}, {pipeline_mode = #tpu.pipeline_mode<synchronous>, transform_indices = @transform_1, window_bounds = array<i64: 1, 32>}, {pipeline_mode = #tpu.pipeline_mode<synchronous>, transform_indices = @transform_2, window_bounds = array<i64: 1, 32>}, {transform_indices = @transform_3, window_bounds = array<i64: 16, 32>}]} {
    %c0 = arith.constant 0 : index
    %c0_0 = arith.constant 0 : index
    %0 = vector.load %arg1[%c0, %c0_0] : memref<16x32xf32, #tpu.memory_space<vmem>>, vector<16x32xf32>
    %cst = arith.constant dense<0.000000e+00> : vector<16xf32>
    %1 = vector.multi_reduction <add>, %0, %cst [1] : vector<16x32xf32> to vector<16xf32>
    %2 = vector.shape_cast %1 : vector<16xf32> to vector<16x1xf32>
    %3 = arith.mulf %0, %0 : vector<16x32xf32>
    %cst_1 = arith.constant dense<0.000000e+00> : vector<16xf32>
    %4 = vector.multi_reduction <add>, %3, %cst_1 [1] : vector<16x32xf32> to vector<16xf32>
    %5 = vector.shape_cast %4 : vector<16xf32> to vector<16x1xf32>
    %cst_2 = arith.constant 3.125000e-02 : f32
    %6 = vector.broadcast %cst_2 : f32 to vector<16x1xf32>
    %7 = arith.mulf %2, %6 : vector<16x1xf32>
    %cst_3 = arith.constant 3.200000e+01 : f32
    %8 = vector.broadcast %cst_3 : f32 to vector<16x1xf32>
    %9 = arith.mulf %8, %7 : vector<16x1xf32>
    %10 = arith.mulf %9, %7 : vector<16x1xf32>
    %11 = arith.subf %5, %10 : vector<16x1xf32>
    %cst_4 = arith.constant 3.100000e+01 : f32
    %12 = vector.broadcast %cst_4 : f32 to vector<16x1xf32>
    %13 = arith.divf %11, %12 : vector<16x1xf32>
    %cst_5 = arith.constant 0.000000e+00 : f32
    %14 = vector.broadcast %cst_5 : f32 to vector<16x1xf32>
    %15 = arith.maximumf %13, %14 : vector<16x1xf32>
    %16 = math.sqrt %15 : vector<16x1xf32>
    %cst_6 = arith.constant 9.99999993E-9 : f32
    %17 = vector.broadcast %cst_6 : f32 to vector<16x1xf32>
    %18 = arith.addf %16, %17 : vector<16x1xf32>
    %19 = tpu.reciprocal %18 {approx = true} : vector<16x1xf32> -> vector<16x1xf32>
    %20 = arith.mulf %18, %19 : vector<16x1xf32>
    %cst_7 = arith.constant 2.000000e+00 : f32
    %21 = vector.broadcast %cst_7 : f32 to vector<16x1xf32>
    %22 = arith.subf %21, %20 : vector<16x1xf32>
    %23 = arith.mulf %19, %22 : vector<16x1xf32>
    %c0_8 = arith.constant 0 : index
    %c0_9 = arith.constant 0 : index
    %24 = vector.load %arg2[%c0_8, %c0_9] : memref<1x32xf32, #tpu.memory_space<vmem>>, vector<1x32xf32>
    %c0_10 = arith.constant 0 : index
    %c0_11 = arith.constant 0 : index
    %25 = vector.load %arg3[%c0_10, %c0_11] : memref<1x32xf32, #tpu.memory_space<vmem>>, vector<1x32xf32>
    %26 = vector.broadcast %7 : vector<16x1xf32> to vector<16x32xf32>
    %27 = arith.subf %0, %26 : vector<16x32xf32>
    %28 = vector.broadcast %23 : vector<16x1xf32> to vector<16x32xf32>
    %29 = arith.mulf %27, %28 : vector<16x32xf32>
    %30 = vector.broadcast %24 : vector<1x32xf32> to vector<16x32xf32>
    %31 = arith.mulf %29, %30 : vector<16x32xf32>
    %32 = vector.broadcast %25 : vector<1x32xf32> to vector<16x32xf32>
    %33 = arith.addf %31, %32 : vector<16x32xf32>
    %c0_12 = arith.constant 0 : index
    %c0_13 = arith.constant 0 : index
    %34 = vector.load %arg4[%c0_12, %c0_13] : memref<16x32xf32, #tpu.memory_space<vmem>>, vector<16x32xf32>
    tpu.vector_store %arg4[%c0_12, %c0_13], %33 {strides = array<i32>} : memref<16x32xf32, #tpu.memory_space<vmem>>, vector<16x32xf32>,
    return
  }
  func.func @transform_0(%arg0: i32) -> (i32, i32) {
    %c0_i32 = arith.constant 0 : i32
    %c0_i32_0 = arith.constant 0 : i32
    return %arg0, %c0_i32 : i32, i32
  }
  func.func @transform_1(%arg0: i32) -> (i32, i32) {
    %c0_i32 = arith.constant 0 : i32
    %c0_i32_0 = arith.constant 0 : i32
    %c0_i32_1 = arith.constant 0 : i32
    return %c0_i32, %c0_i32_0 : i32, i32
  }
  func.func @transform_2(%arg0: i32) -> (i32, i32) {
    %c0_i32 = arith.constant 0 : i32
    %c0_i32_0 = arith.constant 0 : i32
    %c0_i32_1 = arith.constant 0 : i32
    return %c0_i32, %c0_i32_0 : i32, i32
  }
  func.func @transform_3(%arg0: i32) -> (i32, i32) {
    %c0_i32 = arith.constant 0 : i32
    %c0_i32_0 = arith.constant 0 : i32
    return %arg0, %c0_i32 : i32, i32
  }
}

</mosaic_0001>

<bundles_post_ra>
// kernel: tpu_custom_call.1
= control target key start
LH: loop header
LB: loop body
LE: loop exit
PB: predicated region body
PF: predicated region fallthrough
CT: control target
= control target key end

     0   :  { %8 = vsyncpa [#allocation3], 0  ;;  %s236_s0 = inlined_call_operand.hbm [shape: f32[16,32], index: 0, kind: input, shape index: {}]   ;;  %s237_s1 = inlined_call_operand.vmem [shape: f32[1,32], index: 1, kind: input, shape index: {}]   ;;  %s238_s2 = inlined_call_operand.vmem [shape: f32[1,32], index: 2, kind: input, shape index: {}]   ;;  %s239_s3 = inlined_call_operand.hbm [shape: f32[16,32], index: 3, kind: output, shape index: {}]  }
   0x1   :  { %9 = vsyncpa [#allocation4], 0  ;;  %s182_s12 = smov [#allocation2]  }
   0x2   :  { %s15_s13 = sshll.u32 %s182_s12, 4  ;;  %s16_s13 = int_to_ptr.vmem [resolvable:$true] %s15_s13 }
   0x3   :  { %s146_s14 = scalar_lea.vmem %s16_s13, 256  ;;  %p151_p1 = scmp.lt.s32.totalorder %s16_s13, %s16_s13 }
   0x4   :  { %p147_p0 = scmp.ne.s32.totalorder %s16_s13, %s146_s14  ;;  %p152_p2 = scmp.lt.s32.totalorder %s146_s14, %s146_s14 }
   0x6   :  { %p153_p3 = por %p152_p2, %p151_p1 }
   0x8   :  { %p154_p4 = pnand %p153_p3, %p147_p0 }
   0xa   :  { %157 = shalt.err (!%p154_p4)
}
   0xb   :  { %s183_s15 = smov 128   ;;  %s184_s16 = smov 8  }
   0xc   :  { %21 = dma.hbm_to_vmem [thread:$0]  %s236_s0, 256, %s16_s13, [#allocation3], %s183_s15, %s183_s15, %s184_s16  }
   0xd   :  { %178 = dma.done.wait [#allocation3], 256  }
   0xe   :  { %179 = vsyncadd [#allocation3], 4294967040  ;;  %vm31_vm0 = vcmask 261120   ;;  %v29_v0 = vld [vmem:[#allocation2] sm:$0xff]  ;;  %v212_v1 = vld [vmem:[#allocation2 + $0x8] sm:$0xff]  ;;  %s185_s22 = smov [#allocation5]  }
   0xf   :  { %v32_v2 = vsel %vm31_vm0, %v29_v0, 0.0  ;;  %v38_v3 = vmul.f32 %v29_v0, %v29_v0  ;;  %v39_v4 = vmul.f32 %v212_v1, %v212_v1  ;;  %v35_v5 = vsel %vm31_vm0, %v212_v1, 0.0  ;;  %v124_v43 = vld [vmem:[%s237_s1] ss:$0 sm:$0xff]  ;;  %s112_s23 = sshll.u32 %s185_s22, 4  ;;  %s113_s23 = int_to_ptr.vmem [resolvable:$true] %s112_s23 }
  0x10   :  { %33 = vadd.xlane.f32.xlu0 %v32_v2  ;;  %v125_v46 = vld [vmem:[%s238_s2] ss:$0 sm:$0xff]  ;;  %s158_s1 = scalar_lea.vmem %s113_s23, 256  ;;  %p163_p6 = scmp.lt.s32.totalorder %s113_s23, %s113_s23 }
  0x11   :  { %v40_v6 = vsel %vm31_vm0, %v38_v3, 0.0  ;;  %v43_v7 = vsel %vm31_vm0, %v39_v4, 0.0  ;;  %p159_p5 = scmp.ne.s32.totalorder %s113_s23, %s158_s1  ;;  %p164_p7 = scmp.lt.s32.totalorder %s158_s1, %s158_s1 }
  0x12   :  { %41 = vadd.xlane.f32.xlu1 %v40_v6 }
  0x13   :  { %p165_p8 = por %p164_p7, %p163_p6 }
  0x14   :  { %36 = vadd.xlane.f32.xlu0 %v35_v5 }
  0x15   :  { %p166_p9 = pnand %p165_p8, %p159_p5 }
  0x16   :  { %44 = vadd.xlane.f32.xlu1 %v43_v7 }
  0x99   :  { %v34_v8 = vpop.xlane.xlu0 %33 }
  0x9a   :  { %v46_v9 = vmul.f32 0.03125, %v34_v8 }
  0x9b   :  { %v42_v10 = vpop.xlane.xlu1 %41 }
  0x9c   :  { %v48_v11 = vmul.f32 32.0, %v46_v9  ;;  %v85_v40 = vsub.f32 %v29_v0, %v46_v9 }
  0x9d   :  { %v37_v12 = vpop.xlane.xlu0 %36 }
  0x9e   :  { %v47_v13 = vmul.f32 0.03125, %v37_v12  ;;  %v50_v14 = vmul.f32 %v48_v11, %v46_v9 }
  0x9f   :  { %v45_v17 = vpop.xlane.xlu1 %44 }
  0xa0   :  { %v49_v15 = vmul.f32 32.0, %v47_v13  ;;  %v52_v16 = vsub.f32 %v42_v10, %v50_v14  ;;  %v86_v48 = vsub.f32 %v212_v1, %v47_v13 }
  0xa2   :  { %v55_v18 = vmul.f32 0.032258064, %v52_v16  ;;  %v51_v19 = vmul.f32 %v49_v15, %v47_v13 }
  0xa4   :  { %v57_v20 = vmax.f32 %v55_v18, 0.0  ;;  %v53_v21 = vsub.f32 %v45_v17, %v51_v19 }
  0xa6   :  { %130 = vrsqrt.f32 %v57_v20  ;;  %v56_v22 = vmul.f32 0.032258064, %v53_v21  ;;  %vm61_vm1 = vcmp.eq.f32.partialorder %v57_v20, inf  ;;  %v64_v26 = vand.u32 2147483648, %v57_v20 }
  0xa7   :  { %vm63_vm2 = vcmp.eq.f32.partialorder %v57_v20, 0.0 }
  0xa8   :  { %v58_v23 = vmax.f32 %v56_v22, 0.0 }
  0xaa   :  { %132 = vrsqrt.f32 %v58_v23  ;;  %vm68_vm3 = vcmp.eq.f32.partialorder %v58_v23, inf  ;;  %v71_v32 = vand.u32 2147483648, %v58_v23  ;;  %vm70_vm4 = vcmp.eq.f32.partialorder %v58_v23, 0.0 }
  0xb3   :  { %v131_v24 = vpop.eup %130 }
  0xb4   :  { %v60_v25 = vmul.f32 %v131_v24, %v57_v20 }
  0xb6   :  { %v62_v27 = vsel %vm61_vm1, %v57_v20, %v60_v25 }
  0xb7   :  { %v65_v28 = vsel %vm63_vm2, %v64_v26, %v62_v27  ;;  %v133_v29 = vpop.eup %132 }
  0xb8   :  { %v73_v30 = vadd.f32 1e-08, %v65_v28  ;;  %v67_v31 = vmul.f32 %v133_v29, %v58_v23 }
  0xba   :  { %134 = vrcp.f32 %v73_v30  ;;  %v69_v33 = vsel %vm68_vm3, %v58_v23, %v67_v31 }
  0xbb   :  { %v72_v34 = vsel %vm70_vm4, %v71_v32, %v69_v33 }
  0xbc   :  { %v74_v35 = vadd.f32 1e-08, %v72_v34 }
  0xbe   :  { %136 = vrcp.f32 %v74_v35 }
  0xc7   :  { %v135_v36 = vpop.eup %134 }
  0xc8   :  { %v77_v37 = vmul.f32 %v135_v36, %v73_v30 }
  0xca   :  { %v79_v38 = vsub.f32 2.0, %v77_v37 }
  0xcb   :  { %v137_v39 = vpop.eup %136 }
  0xcc   :  { %v81_v41 = vmul.f32 %v135_v36, %v79_v38  ;;  %v78_v42 = vmul.f32 %v137_v39, %v74_v35 }
  0xce   :  { %v87_v44 = vmul.f32 %v85_v40, %v81_v41  ;;  %v80_v45 = vsub.f32 2.0, %v78_v42 }
  0xd0   :  { %v95_v47 = vmul.f32 %v124_v43, %v87_v44  ;;  %v82_v49 = vmul.f32 %v137_v39, %v80_v45 }
  0xd2   :  { %v103_v50 = vadd.f32 %v125_v46, %v95_v47  ;;  %v88_v51 = vmul.f32 %v86_v48, %v82_v49 }
  0xd4   :  { %105 = vst.msk [vmem:[#allocation5] sm:$0xff] %vm31_vm0, %v103_v50  ;;  %v96_v52 = vmul.f32 %v124_v43, %v88_v51 }
  0xd6   :  { %v104_v53 = vadd.f32 %v125_v46, %v96_v52 }
  0xd8   :  { %106 = vst.msk [vmem:[#allocation5 + $0x8] sm:$0xff] %vm31_vm0, %v104_v53 }
  0xd9   :  { %169 = shalt.err (!%p166_p9)
}
  0xda   :  { %118 = dma.vmem_to_hbm [thread:$0]  %s113_s23, 256, %s239_s3, [#allocation4], %s183_s15, %s183_s15, %s184_s16  }
  0xdb   :  { %180 = dma.done.wait [#allocation4], 256  }
  0xdc   :  { %181 = vsyncadd [#allocation4], 4294967040 }
  0xdd   :  { %122 = vsyncpa [#allocation3], 1 }
  0xde   :  { %123 = vsyncpa [#allocation4], 1 }

</bundles_post_ra>
